<compile_context>
chip_gen: v7x
topology: tpu7x:2x2x1
jax: 0.10.0
libtpu: 0.0.40
codegen_flags: <defaults>
</compile_context>

<pallas_src>
import jax
import jax.numpy as jnp
from jax.experimental import pallas as pl
from jax.experimental.pallas import tpu as pltpu


def mlp_kernel(x_ref, w1_ref, b1_ref, w2_ref, b2_ref, w3_ref, b3_ref, o_ref):
    # x_ref : [2,  T]  (batch on lanes, VPU compute dtype)
    # w1_ref: [16, 2]  b1_ref: [16, 1]   (VPU compute dtype)
    # w2_ref: [16, 16] (bf16, MXU input) b2_ref: [16, 1]  (f32)
    # w3_ref: [16, 1]  (VPU compute dtype) b3_ref: [1, 1] (f32)
    # o_ref : [1,  T]  (f32)
    x = x_ref[...]                                                  # [2, T]
    w1 = w1_ref[...]                                                # [16, 2]

    # Layer 1 (in_features=2): VPU broadcast-FMAs; a K=2 matmul would waste the MXU.
    h1 = w1[:, 0:1] * x[0:1, :] + w1[:, 1:2] * x[1:2, :] + b1_ref[...]     # [16, T]
    h1 = jnp.maximum(h1, 0.0).astype(w2_ref.dtype)                         # ReLU -> bf16

    # Layer 2 (16x16): single bf16 MXU pass, f32 accumulation, lane-dense N (batch tile).
    h2 = jnp.dot(w2_ref[...], h1, preferred_element_type=jnp.float32) + b2_ref[...]
    h2 = jnp.maximum(h2, 0.0).astype(w3_ref.dtype)                         # [16, T]

    # Layer 3 (out_features=1): VPU multiply + sublane (XLU) reduce, f32 accumulation.
    out = jnp.sum(w3_ref[...] * h2, axis=0, keepdims=True, dtype=jnp.float32)
    out = out + b3_ref[...]                                                # [1, T]
    o_ref[...] = out.astype(o_ref.dtype)


def _hw_config():
    """Per-chip tile cap, VMEM limit and VPU compute dtype."""
    try:
        kind = jax.devices()[0].device_kind.lower()
    except Exception:
        kind = ""
    if "v7" in kind:
        # 64 MiB physical VMEM per TC -> cap the lane tile, keep the grid even
        # so dimension_semantics=("parallel",) feeds both TensorCores.
        return dict(max_tile_n=16 * 1024, vmem_limit=48 * 1024 * 1024,
                    vpu_dtype=jnp.bfloat16, prefer_even_steps=True)
    if "v6" in kind:
        # 128 MiB VMEM, native bf16 VALU.
        return dict(max_tile_n=64 * 1024, vmem_limit=96 * 1024 * 1024,
                    vpu_dtype=jnp.bfloat16, prefer_even_steps=True)
    if "v5" in kind:
        # 128 MiB VMEM but no bf16 VPU -> keep VPU math in f32; scoped default
        # is only 16 MiB so the explicit limit matters here.
        return dict(max_tile_n=64 * 1024, vmem_limit=96 * 1024 * 1024,
                    vpu_dtype=jnp.float32, prefer_even_steps=False)
    # Unknown / older chip: conservative defaults.
    return dict(max_tile_n=8 * 1024, vmem_limit=None,
                vpu_dtype=jnp.float32, prefer_even_steps=False)


def _choose_tiling(n, max_tile_n, prefer_even_steps):
    """Lane-dense batch tile (multiple of 128) and padded batch size."""
    n128 = max(128, pl.cdiv(n, 128) * 128)
    if n128 <= max_tile_n:
        return n128, n128                       # single grid step
    steps = pl.cdiv(n128, max_tile_n)
    if prefer_even_steps and steps % 2 == 1:
        steps += 1                              # even grid -> both TCs stay busy
    t = pl.cdiv(pl.cdiv(n128, steps), 128) * 128
    return t, steps * t


def circle_classification_forward(x, params, *, features_first=False, max_tile_n=None):
    """Forward pass of CircleClassificationModel.

    x: [N, 2] (or [2, N] if features_first=True). Returns logits [N, 1] float32,
    same semantics as the torch module (y = W x + b per layer, ReLU between).
    """
    w1, b1, w2, b2, w3, b3 = params          # PyTorch layout: w [out, in], b [out]
    cfg = _hw_config()
    if max_tile_n is None:
        max_tile_n = cfg["max_tile_n"]
    vpu_dtype = cfg["vpu_dtype"]

    n = x.shape[1] if features_first else x.shape[0]
    t, n_pad = _choose_tiling(n, max_tile_n, cfg["prefer_even_steps"])

    # Batch on lanes. Ideally the producer hands us features-first [2, N] data so
    # this is pad-only; otherwise it is a single pad+transpose layout pass.
    x_fl = x.astype(vpu_dtype) if features_first else x.astype(vpu_dtype).T   # [2, N]
    x_t = jnp.pad(x_fl, ((0, 0), (0, n_pad - n)))                             # [2, n_pad]

    w1c = w1.astype(vpu_dtype)                        # [16, 2]
    b1c = b1.reshape(16, 1).astype(vpu_dtype)         # [16, 1]
    w2c = w2.astype(jnp.bfloat16)                     # [16, 16]  MXU input (f32 acc)
    b2c = b2.reshape(16, 1).astype(jnp.float32)       # [16, 1]
    w3c = w3.reshape(1, 16).T.astype(vpu_dtype)       # [16, 1]   (channels on sublanes)
    b3c = b3.reshape(1, 1).astype(jnp.float32)        # [1, 1]

    # Tiny weights/biases: constant index_map -> stay resident in VMEM across steps.
    def const_spec(a):
        return pl.BlockSpec(a.shape, lambda i: (0,) * a.ndim)

    flops_per_elem = 2 * (2 * 16) + 2 * (16 * 16) + 2 * 16
    bytes_accessed = (x_t.size * x_t.dtype.itemsize + n_pad * 4
                      + sum(a.size * a.dtype.itemsize
                            for a in (w1c, b1c, w2c, b2c, w3c, b3c)))

    compiler_kwargs = dict(dimension_semantics=("parallel",))
    if cfg["vmem_limit"] is not None:
        compiler_kwargs["vmem_limit_bytes"] = cfg["vmem_limit"]

    out_t = pl.pallas_call(
        mlp_kernel,
        out_shape=jax.ShapeDtypeStruct((1, n_pad), jnp.float32),
        grid=(n_pad // t,),
        in_specs=[
            pl.BlockSpec((2, t), lambda i: (0, i)),   # x tile (batch on lanes)
            const_spec(w1c), const_spec(b1c),
            const_spec(w2c), const_spec(b2c),
            const_spec(w3c), const_spec(b3c),
        ],
        out_specs=pl.BlockSpec((1, t), lambda i: (0, i)),
        compiler_params=pltpu.CompilerParams(**compiler_kwargs),
        cost_estimate=pl.CostEstimate(
            flops=int(flops_per_elem) * int(n_pad),
            transcendentals=0,
            bytes_accessed=int(bytes_accessed)),
    )(x_t, w1c, b1c, w2c, b2c, w3c, b3c)

    return out_t[:, :n].T                              # [N, 1] float32


def init_params(key):
    # Deterministic init mimicking nn.Linear's U(-1/sqrt(fan_in), 1/sqrt(fan_in)),
    # stored in PyTorch layout (weight: [out, in], bias: [out]).
    ks = jax.random.split(key, 6)

    def lin(kw, kb, fan_in, fan_out):
        bound = 1.0 / jnp.sqrt(float(fan_in))
        w = jax.random.uniform(kw, (fan_out, fan_in), jnp.float32, -bound, bound)
        b = jax.random.uniform(kb, (fan_out,), jnp.float32, -bound, bound)
        return w, b

    w1, b1 = lin(ks[0], ks[1], 2, 16)
    w2, b2 = lin(ks[2], ks[3], 16, 16)
    w3, b3 = lin(ks[4], ks[5], 16, 1)
    return (w1, b1, w2, b2, w3, b3)


def reference_forward(x, params):
    w1, b1, w2, b2, w3, b3 = params
    h1 = jnp.maximum(x @ w1.T + b1, 0.0)
    h2 = jnp.maximum(h1 @ w2.T + b2, 0.0)
    return h2 @ w3.T + b3


if __name__ == "__main__":
    key = jax.random.PRNGKey(0)
    kx, kp = jax.random.split(key)
    batch = 256
    x = jax.random.normal(kx, (batch, 2), jnp.float32)   # circle dataset: 2 features
    params = init_params(kp)

    out = jax.block_until_ready(circle_classification_forward(x, params))
    ref = reference_forward(x, params)

    assert out.shape == (batch, 1)
    # bf16 MXU inputs (and bf16 VPU activations on v6e/v7x) -> loosened tolerance
    # vs. the pure-f32 reference, per review guidance.
    max_err = float(jnp.max(jnp.abs(out - ref)))
    assert jnp.allclose(out, ref, atol=5e-2, rtol=5e-2), \
        f"mismatch vs JAX reference (max abs err {max_err:.4f})"
    print("KERNEL_OK")
</pallas_src>

<mosaic_0001>
module attributes {stable_mosaic.version = 11 : i64} {
  func.func @mlp_kernel(%arg0: i32, %arg1: memref<2x256xf32, #tpu.memory_space<vmem>>, %arg2: memref<16x2xf32, #tpu.memory_space<vmem>>, %arg3: memref<16x1xf32, #tpu.memory_space<vmem>>, %arg4: memref<16x16xbf16, #tpu.memory_space<vmem>>, %arg5: memref<16x1xf32, #tpu.memory_space<vmem>>, %arg6: memref<16x1xf32, #tpu.memory_space<vmem>>, %arg7: memref<1x1xf32, #tpu.memory_space<vmem>>, %arg8: memref<1x256xf32, #tpu.memory_space<vmem>>) attributes {dimension_semantics = [#tpu.dimension_semantics<parallel>], iteration_bounds = array<i64: 1>, scalar_prefetch = 0 : i64, scratch_operands = 0 : i64, tpu.core_type = #tpu.core_type<tc>, window_params = [{transform_indices = @transform_0, window_bounds = array<i64: 2, 256>}, {pipeline_mode = #tpu.pipeline_mode<synchronous>, transform_indices = @transform_1, window_bounds = array<i64: 16, 2>}, {pipeline_mode = #tpu.pipeline_mode<synchronous>, transform_indices = @transform_2, window_bounds = array<i64: 16, 1>}, {pipeline_mode = #tpu.pipeline_mode<synchronous>, transform_indices = @transform_3, window_bounds = array<i64: 16, 16>}, {pipeline_mode = #tpu.pipeline_mode<synchronous>, transform_indices = @transform_4, window_bounds = array<i64: 16, 1>}, {pipeline_mode = #tpu.pipeline_mode<synchronous>, transform_indices = @transform_5, window_bounds = array<i64: 16, 1>}, {pipeline_mode = #tpu.pipeline_mode<synchronous>, transform_indices = @transform_6, window_bounds = array<i64: 1, 1>}, {transform_indices = @transform_7, window_bounds = array<i64: 1, 256>}]} {
    %c0 = arith.constant 0 : index
    %c0_0 = arith.constant 0 : index
    %0 = vector.load %arg1[%c0, %c0_0] : memref<2x256xf32, #tpu.memory_space<vmem>>, vector<2x256xf32>
    %c0_1 = arith.constant 0 : index
    %c0_2 = arith.constant 0 : index
    %1 = vector.load %arg2[%c0_1, %c0_2] : memref<16x2xf32, #tpu.memory_space<vmem>>, vector<16x2xf32>
    %2 = vector.extract_strided_slice %1 {offsets = [0, 0], sizes = [16, 1], strides = [1, 1]} : vector<16x2xf32> to vector<16x1xf32>
    %3 = vector.extract_strided_slice %0 {offsets = [0, 0], sizes = [1, 256], strides = [1, 1]} : vector<2x256xf32> to vector<1x256xf32>
    %4 = vector.broadcast %2 : vector<16x1xf32> to vector<16x256xf32>
    %5 = vector.broadcast %3 : vector<1x256xf32> to vector<16x256xf32>
    %6 = arith.mulf %4, %5 : vector<16x256xf32>
    %7 = vector.extract_strided_slice %1 {offsets = [0, 1], sizes = [16, 1], strides = [1, 1]} : vector<16x2xf32> to vector<16x1xf32>
    %8 = vector.extract_strided_slice %0 {offsets = [1, 0], sizes = [1, 256], strides = [1, 1]} : vector<2x256xf32> to vector<1x256xf32>
    %9 = vector.broadcast %7 : vector<16x1xf32> to vector<16x256xf32>
    %10 = vector.broadcast %8 : vector<1x256xf32> to vector<16x256xf32>
    %11 = arith.mulf %9, %10 : vector<16x256xf32>
    %12 = arith.addf %6, %11 : vector<16x256xf32>
    %c0_3 = arith.constant 0 : index
    %c0_4 = arith.constant 0 : index
    %13 = vector.load %arg3[%c0_3, %c0_4] : memref<16x1xf32, #tpu.memory_space<vmem>>, vector<16x1xf32>
    %14 = vector.broadcast %13 : vector<16x1xf32> to vector<16x256xf32>
    %15 = arith.addf %12, %14 : vector<16x256xf32>
    %cst = arith.constant 0.000000e+00 : f32
    %16 = vector.broadcast %cst : f32 to vector<16x256xf32>
    %17 = arith.maximumf %15, %16 : vector<16x256xf32>
    %18 = arith.truncf %17 : vector<16x256xf32> to vector<16x256xbf16>
    %c0_5 = arith.constant 0 : index
    %c0_6 = arith.constant 0 : index
    %19 = vector.load %arg4[%c0_5, %c0_6] : memref<16x16xbf16, #tpu.memory_space<vmem>>, vector<16x16xbf16>
    %cst_7 = arith.constant dense<0.000000e+00> : vector<16x256xf32>
    %20 = tpu.matmul %19, %18, %cst_7 {dimension_numbers = #tpu.dot_dimension_numbers<[1], [0], [0], [1], [0, 0, 1, 1], [], []>} : vector<16x16xbf16>, vector<16x256xbf16>, vector<16x256xf32> -> vector<16x256xf32>
    %c0_8 = arith.constant 0 : index
    %c0_9 = arith.constant 0 : index
    %21 = vector.load %arg5[%c0_8, %c0_9] : memref<16x1xf32, #tpu.memory_space<vmem>>, vector<16x1xf32>
    %22 = vector.broadcast %21 : vector<16x1xf32> to vector<16x256xf32>
    %23 = arith.addf %20, %22 : vector<16x256xf32>
    %cst_10 = arith.constant 0.000000e+00 : f32
    %24 = vector.broadcast %cst_10 : f32 to vector<16x256xf32>
    %25 = arith.maximumf %23, %24 : vector<16x256xf32>
    %c0_11 = arith.constant 0 : index
    %c0_12 = arith.constant 0 : index
    %26 = vector.load %arg6[%c0_11, %c0_12] : memref<16x1xf32, #tpu.memory_space<vmem>>, vector<16x1xf32>
    %27 = vector.broadcast %26 : vector<16x1xf32> to vector<16x256xf32>
    %28 = arith.mulf %27, %25 : vector<16x256xf32>
    %cst_13 = arith.constant dense<0.000000e+00> : vector<256xf32>
    %29 = vector.multi_reduction <add>, %28, %cst_13 [0] : vector<16x256xf32> to vector<256xf32>
    %30 = vector.shape_cast %29 : vector<256xf32> to vector<1x256xf32>
    %c0_14 = arith.constant 0 : index
    %c0_15 = arith.constant 0 : index
    %31 = vector.load %arg7[%c0_14, %c0_15] : memref<1x1xf32, #tpu.memory_space<vmem>>, vector<1x1xf32>
    %32 = vector.broadcast %31 : vector<1x1xf32> to vector<1x256xf32>
    %33 = arith.addf %30, %32 : vector<1x256xf32>
    %c0_16 = arith.constant 0 : index
    %c0_17 = arith.constant 0 : index
    %34 = vector.load %arg8[%c0_16, %c0_17] : memref<1x256xf32, #tpu.memory_space<vmem>>, vector<1x256xf32>
    tpu.vector_store %arg8[%c0_16, %c0_17], %33 {strides = array<i32>} : memref<1x256xf32, #tpu.memory_space<vmem>>, vector<1x256xf32>,
    return
  }
  func.func @transform_0(%arg0: i32) -> (i32, i32) {
    %c0_i32 = arith.constant 0 : i32
    %c0_i32_0 = arith.constant 0 : i32
    return %c0_i32, %arg0 : i32, i32
  }
  func.func @transform_1(%arg0: i32) -> (i32, i32) {
    %c0_i32 = arith.constant 0 : i32
    %c0_i32_0 = arith.constant 0 : i32
    %c0_i32_1 = arith.constant 0 : i32
    return %c0_i32, %c0_i32_0 : i32, i32
  }
  func.func @transform_2(%arg0: i32) -> (i32, i32) {
    %c0_i32 = arith.constant 0 : i32
    %c0_i32_0 = arith.constant 0 : i32
    %c0_i32_1 = arith.constant 0 : i32
    return %c0_i32, %c0_i32_0 : i32, i32
  }
  func.func @transform_3(%arg0: i32) -> (i32, i32) {
    %c0_i32 = arith.constant 0 : i32
    %c0_i32_0 = arith.constant 0 : i32
    %c0_i32_1 = arith.constant 0 : i32
    return %c0_i32, %c0_i32_0 : i32, i32
  }
  func.func @transform_4(%arg0: i32) -> (i32, i32) {
    %c0_i32 = arith.constant 0 : i32
    %c0_i32_0 = arith.constant 0 : i32
    %c0_i32_1 = arith.constant 0 : i32
    return %c0_i32, %c0_i32_0 : i32, i32
  }
  func.func @transform_5(%arg0: i32) -> (i32, i32) {
    %c0_i32 = arith.constant 0 : i32
    %c0_i32_0 = arith.constant 0 : i32
    %c0_i32_1 = arith.constant 0 : i32
    return %c0_i32, %c0_i32_0 : i32, i32
  }
  func.func @transform_6(%arg0: i32) -> (i32, i32) {
    %c0_i32 = arith.constant 0 : i32
    %c0_i32_0 = arith.constant 0 : i32
    %c0_i32_1 = arith.constant 0 : i32
    return %c0_i32, %c0_i32_0 : i32, i32
  }
  func.func @transform_7(%arg0: i32) -> (i32, i32) {
    %c0_i32 = arith.constant 0 : i32
    %c0_i32_0 = arith.constant 0 : i32
    return %c0_i32, %arg0 : i32, i32
  }
}

</mosaic_0001>

<bundles_post_ra>
// kernel: tpu_custom_call.1
= control target key start
LH: loop header
LB: loop body
LE: loop exit
PB: predicated region body
PF: predicated region fallthrough
CT: control target
= control target key end

     0   :  { %s409_s0 = inlined_call_operand.vmem [shape: f32[2,256], index: 0, kind: input, shape index: {}]   ;;  %s410_s1 = inlined_call_operand.vmem [shape: f32[16,2], index: 1, kind: input, shape index: {}]   ;;  %s411_s2 = inlined_call_operand.vmem [shape: f32[16,1], index: 2, kind: input, shape index: {}]   ;;  %s412_s3 = inlined_call_operand.vmem [shape: bf16[16,16], index: 3, kind: input, shape index: {}]   ;;  %s413_s4 = inlined_call_operand.vmem [shape: f32[16,1], index: 4, kind: input, shape index: {}]   ;;  %s414_s5 = inlined_call_operand.vmem [shape: f32[16,1], index: 5, kind: input, shape index: {}]   ;;  %s415_s6 = inlined_call_operand.<no memory space> [shape: f32[1,1], index: 6, kind: input, shape index: {}]   ;;  %s416_s7 = inlined_call_operand.hbm [shape: f32[1,256], index: 7, kind: output, shape index: {}]  }
   0x1   :  { %v12_v0 = vstv %s415_s6 }
   0x2   :  { %13 = vst [vmem:[#allocation2] sm:$0x1] %v12_v0 }
   0x3   :  { %v31_v1 = vld [vmem:[%s410_s1] sm:$0xff]  ;;  %v305_v2 = vmov 1   ;;  %v306_v3 = vmov 0   ;;  %v32_v4 = vld [vmem:[%s410_s1 + $0x8] sm:$0xff] }
   0x4   :  { %278 = vset.pattern.permute.xlu1 %v305_v2  ;;  %277 = vset.pattern.permute.xlu0 %v306_v3 }
   0x5   :  { %67 = vperm.xlu1 %278, %v31_v1   ;;  %35 = vperm.xlu0 %277, %v31_v1  }
   0x6   :  { %177 = vmatprep.mubr.bf16.mxu0 %v306_v3 }
   0x7   :  { %14 = vsyncpa [#allocation4], 0  ;;  %v100_v5 = vld [vmem:[%s411_s2] sm:$0xff]  ;;  %v101_v6 = vld [vmem:[%s411_s2 + $0x8] sm:$0xff]  ;;  %v44_v12 = vlaneseq  ;;  %vm141_vm0 = vcmask 130048  }
   0x8   :  { %v124_v7 = vld [vmem:[%s413_s4] sm:$0xff]  ;;  %v125_v8 = vld [vmem:[%s413_s4 + $0x8] sm:$0xff] }
   0x9   :  { %71 = vperm.xlu1 %278, %v32_v4   ;;  %40 = vperm.xlu0 %277, %v32_v4   ;;  %v192_v9 = vld [vmem:[%s414_s5] sm:$0xff]  ;;  %v193_v10 = vld [vmem:[%s414_s5 + $0x8] sm:$0xff]  ;;  %v377_v13 = vshrl.u32 %v44_v12, 7  ;;  %vm254_vm1 = vcmp.lt.s32.totalorder %v44_v12, 256 }
   0xa   :  { %v222_v11 = vld [vmem:[#allocation2] sm:$0x1] }
   0xb   :  { %v76_v14 = vsub.s32 1, %v377_v13  ;;  %v80_v15 = vsub.s32 3, %v377_v13  ;;  %v382_v16 = vsub.s32 0, %v377_v13  ;;  %v50_v17 = vsub.s32 2, %v377_v13  ;;  %v30_v18 = vld [vmem:[%s409_s0] sm:$0xf] }
   0xc   :  { %v280_v55 = vld [vmem:[%s412_s3] sm:$0xff]   ;;  %s308_s3 = smov [#allocation3]  }
   0xd   :  { %279 = vset.pattern.permute.xlu1 %v306_v3  ;;  %104 = vperm.xlu0 %277, %v100_v5   ;;  %v77_v19 = vrot.slane %v30_v18, %v76_v14  ;;  %v81_v20 = vrot.slane %v30_v18, %v80_v15  ;;  %v47_v21 = vrot.slane %v30_v18, %v382_v16  ;;  %s263_s17 = sshll.u32 %s308_s3, 4  ;;  %s264_s17 = int_to_ptr.vmem [resolvable:$true] %s263_s17 }
   0xe   :  { %109 = vperm.xlu1 %279, %v101_v6   ;;  %v51_v22 = vrot.slane %v30_v18, %v50_v17  ;;  %s281_s18 = scalar_lea.vmem %s264_s17, 32  ;;  %p286_p1 = scmp.lt.s32.totalorder %s264_s17, %s264_s17 }
   0xf   :  { %v87_v23 = vrot.slane %v77_v19, %v76_v14  ;;  %v91_v24 = vrot.slane %v81_v20, %v76_v14  ;;  %v57_v25 = vrot.slane %v47_v21, %v382_v16  ;;  %p282_p0 = scmp.ne.s32.totalorder %s264_s17, %s281_s18  ;;  %p287_p2 = scmp.lt.s32.totalorder %s281_s18, %s281_s18 }
  0x10   :  { %v61_v26 = vrot.slane %v51_v22, %v382_v16 }
  0x11   :  { %128 = vperm.xlu0 %277, %v124_v7   ;;  %p288_p3 = por %p287_p2, %p286_p1 }
  0x12   :  { %133 = vperm.xlu1 %279, %v125_v8  }
  0x13   :  { %p289_p4 = pnand %p288_p3, %p282_p0 }
  0x15   :  { %196 = vperm.xlu0 %277, %v192_v9  }
  0x16   :  { %201 = vperm.xlu1 %279, %v193_v10  }
  0x19   :  { %225 = vperm.xlu0 %277, %v222_v11  }
  0x84   :  { %v68_v27 = vpop.permute.xlu1 %67  ;;  %v36_v28 = vpop.permute.xlu0 %35 }
  0x85   :  { %v92_v29 = vmul.f32 %v87_v23, %v68_v27  ;;  %v93_v30 = vmul.f32 %v91_v24, %v68_v27  ;;  %v62_v31 = vmul.f32 %v57_v25, %v36_v28  ;;  %v63_v32 = vmul.f32 %v61_v26, %v36_v28 }
  0x87   :  { %v96_v39 = vadd.f32 %v92_v29, %v62_v31  ;;  %v97_v40 = vadd.f32 %v93_v30, %v63_v32 }
  0x88   :  { %v72_v33 = vpop.permute.xlu1 %71  ;;  %v41_v34 = vpop.permute.xlu0 %40 }
  0x89   :  { %v94_v35 = vmul.f32 %v87_v23, %v72_v33  ;;  %v95_v36 = vmul.f32 %v91_v24, %v72_v33  ;;  %v64_v37 = vmul.f32 %v57_v25, %v41_v34  ;;  %v65_v38 = vmul.f32 %v61_v26, %v41_v34 }
  0x8a   :  { %v307_v23 = vmov 1966171168  }
  0x8b   :  { %v98_v41 = vadd.f32 %v94_v35, %v64_v37  ;;  %v99_v42 = vadd.f32 %v95_v36, %v65_v38  ;;  %v238_v24 = vunpack.c.l.s4 %v307_v23 }
  0x8c   :  { %v105_v43 = vpop.permute.xlu0 %104 }
  0x8d   :  { %v112_v44 = vadd.f32 %v105_v43, %v96_v39  ;;  %v113_v45 = vadd.f32 %v105_v43, %v97_v40  ;;  %v110_v46 = vpop.permute.xlu1 %109  ;;  %v239_v30 = vunpack.c.0.s8 %v238_v24 }
  0x8e   :  { %v114_v47 = vadd.f32 %v110_v46, %v98_v41  ;;  %v115_v48 = vadd.f32 %v110_v46, %v99_v42 }
  0x8f   :  { %v116_v49 = vmax.f32 %v112_v44, 0.0  ;;  %v117_v50 = vmax.f32 %v113_v45, 0.0  ;;  %v242_v36 = vsub.s32 %v239_v30, %v377_v13 }
  0x90   :  { %v118_v51 = vmax.f32 %v114_v47, 0.0  ;;  %v119_v52 = vmax.f32 %v115_v48, 0.0  ;;  %v129_v56 = vpop.permute.xlu0 %128 }
  0x91   :  { %v134_v57 = vpop.permute.xlu1 %133 }
  0x92   :  { %v121_v53 = vpack.c.bf16 %v119_v52, %v117_v50  ;;  %v120_v54 = vpack.c.bf16 %v118_v51, %v116_v49 }
  0x94   :  { %145 = vmatprep.subr.bf16.mxu0 %v121_v53  ;;  %v197_v5 = vpop.permute.xlu0 %196 }
  0x95   :  { %146 = vmatpush1.bf16.msra.mxu0 %v120_v54  ;;  %v202_v6 = vpop.permute.xlu1 %201 }
  0x98   :  { %272 = vmatmul.mubr.msk.bf16.vlgmr.msra.gmra.mrb[0].mxu0 %vm141_vm0, %v280_v55  ;;  %v226_v26 = vpop.permute.xlu0 %225 }
  0x99   :  { %v231_v31 = vrot.slane %v226_v26, %v382_v16 }
 0x16b   :  { %v179_v58 = vpop.f32.mrb[0].mxu0 }
 0x16c   :  { %v180_v59 = vadd.f32 %v179_v58, %v129_v56  ;;  %v181_v60 = vpop.f32.mrb[1].mxu0 }
 0x16d   :  { %v182_v61 = vadd.f32 %v181_v60, %v129_v56  ;;  %v183_v62 = vpop.f32.mrb[2].mxu0 }
 0x16e   :  { %v188_v63 = vmax.f32 %v180_v59, 0.0  ;;  %v184_v0 = vadd.f32 %v183_v62, %v134_v57  ;;  %v185_v1 = vpop.f32.mrb[3].mxu0 }
 0x16f   :  { %v189_v2 = vmax.f32 %v182_v61, 0.0  ;;  %v186_v3 = vadd.f32 %v185_v1, %v134_v57 }
 0x170   :  { %v190_v4 = vmax.f32 %v184_v0, 0.0  ;;  %v204_v8 = vmul.f32 %v197_v5, %v188_v63 }
 0x171   :  { %v191_v7 = vmax.f32 %v186_v3, 0.0  ;;  %v205_v10 = vmul.f32 %v197_v5, %v189_v2 }
 0x172   :  { %v206_v9 = vmul.f32 %v202_v6, %v190_v4 }
 0x173   :  { %v207_v11 = vmul.f32 %v202_v6, %v191_v7 }
 0x174   :  { %v208_v14 = vadd.f32 %v206_v9, %v204_v8 }
 0x175   :  { %v215_v15 = vadd.f32 %v207_v11, %v205_v10 }
 0x176   :  { %v209_v17 = vrot.slane %v208_v14, 4 }
 0x177   :  { %v216_v18 = vrot.slane %v215_v15, 4 }
 0x178   :  { %v210_v19 = vadd.f32 %v209_v17, %v208_v14 }
 0x179   :  { %v217_v20 = vadd.f32 %v216_v18, %v215_v15 }
 0x17a   :  { %v211_v21 = vrot.slane %v210_v19, 2 }
 0x17b   :  { %v218_v22 = vrot.slane %v217_v20, 2 }
 0x17c   :  { %v212_v25 = vadd.f32 %v211_v21, %v210_v19 }
 0x17d   :  { %v219_v27 = vadd.f32 %v218_v22, %v217_v20 }
 0x17e   :  { %v213_v28 = vrot.slane %v212_v25, 1 }
 0x17f   :  { %v220_v29 = vrot.slane %v219_v27, 1 }
 0x180   :  { %v214_v32 = vadd.f32 %v213_v28, %v212_v25 }
 0x181   :  { %v221_v33 = vadd.f32 %v220_v29, %v219_v27 }
 0x182   :  { %v232_v34 = vadd.f32 %v231_v31, %v214_v32 }
 0x183   :  { %v233_v35 = vadd.f32 %v231_v31, %v221_v33 }
 0x185   :  { %v236_v37 = vcombine.low %v232_v34, %v233_v35 }
 0x187   :  { %v243_v38 = vrot.slane %v236_v37, %v242_v36 }
 0x189   :  { %v250_v39 = vrot.slane %v243_v38, %v242_v36 }
 0x18b   :  { %256 = vst.msk [vmem:[#allocation3] sm:$0x3] %vm254_vm1, %v250_v39 }
 0x18c   :  { %292 = shalt.err (!%p289_p4)
}
 0x18d   :  { %s293_s21 = scalar_lea.hbm %s416_s7, 32 }
 0x18e   :  { %p294_p5 = scmp.ne.s32.totalorder %s416_s7, %s293_s21  ;;  %p297_p6 = scmp.lt.u32.totalorder %s293_s21, %s416_s7 }
 0x190   :  { %p299_p7 = pnand %p297_p6, %p294_p5 }
 0x192   :  { %302 = shalt.err (!%p299_p7)
}
 0x193   :  { %266 = dma.vmem_to_hbm [thread:$0]  %s264_s17, 32, %s416_s7, [#allocation4]  }
 0x194   :  { %303 = dma.done.wait [#allocation4], 32  }
 0x195   :  { %304 = vsyncadd [#allocation4], 4294967264 }
 0x196   :  { %270 = vsyncpa [#allocation4], 1 }

</bundles_post_ra>
